<compile_context>
chip_gen: v6e
topology: v6e:2x2x1
jax: 0.10.0
libtpu: 0.0.40
codegen_flags: <defaults>
</compile_context>

<pallas_src>
import jax
import jax.numpy as jnp
from jax.experimental import pallas as pl
from jax.experimental.pallas import tpu as pltpu


def _head_kernel(x_ref, w_ref, b_ref, raw_ref, sig_ref):
    # x_ref: (K, tp) pixel tile of one batch element; w_ref: (N, K); b_ref: (N, 1)
    acc = jnp.dot(w_ref[...], x_ref[...], preferred_element_type=jnp.float32)
    acc = acc + b_ref[...]
    raw_ref[...] = acc
    sig_ref[...] = jax.nn.sigmoid(acc)


def _pick_pixel_tile(P, K, N, budget_bytes=20 * 1024 * 1024):
    """Largest lane-aligned pixel tile whose double-buffered f32 set fits VMEM."""
    if P <= 128:
        return P  # full-extent block: always legal, no 128-divisibility needed
    fixed = 8 * (N * K + N)       # weights + bias (counted as double-buffered)
    per_px = 8 * (K + 2 * N)      # x tile + raw tile + sig tile, double-buffered
    cap = max(128, (budget_bytes - fixed) // per_px)
    tp = min(2048, cap, P)
    tp = (tp // 128) * 128
    return max(tp, 128)


def conv1x1_head(x3, w, b):
    """x3: (bs, K, P) NCHW-flattened activations; w: (N, K); b: (N, 1).

    Returns (raw, sigmoid), both shaped (bs, N, P) — PyTorch's NCHW Conv2d
    output with the spatial dims flattened."""
    bs, K, P = x3.shape
    N = w.shape[0]
    tp = _pick_pixel_tile(P, K, N)
    grid = (bs, pl.cdiv(P, tp))

    cost = pl.CostEstimate(
        flops=2 * bs * P * K * N,
        transcendentals=bs * P * N,
        bytes_accessed=4 * (bs * P * K + N * K + N + 2 * bs * P * N),
    )

    return pl.pallas_call(
        _head_kernel,
        out_shape=(
            jax.ShapeDtypeStruct((bs, N, P), jnp.float32),
            jax.ShapeDtypeStruct((bs, N, P), jnp.float32),
        ),
        grid_spec=pltpu.PrefetchScalarGridSpec(
            num_scalar_prefetch=0,
            grid=grid,
            in_specs=[
                pl.BlockSpec((None, K, tp), lambda bi, pj: (bi, 0, pj)),
                pl.BlockSpec((N, K), lambda bi, pj: (0, 0)),   # stays resident
                pl.BlockSpec((N, 1), lambda bi, pj: (0, 0)),   # stays resident
            ],
            out_specs=[
                pl.BlockSpec((None, N, tp), lambda bi, pj: (bi, 0, pj)),
                pl.BlockSpec((None, N, tp), lambda bi, pj: (bi, 0, pj)),
            ],
        ),
        compiler_params=pltpu.CompilerParams(
            dimension_semantics=("parallel", "parallel"),
            vmem_limit_bytes=32 * 1024 * 1024,
        ),
        cost_estimate=cost,
    )(x3, w, b)


class YOLOHeadPallas:
    """JAX/Pallas re-implementation of the PyTorch YOLOHead forward pass."""

    def __init__(self, nc=2, anchors=(), ch=(), key=None):
        self.nc = nc
        self.no = nc + 5
        self.nl = len(anchors)
        self.na = len(anchors[0]) // 2
        a = jnp.asarray(anchors, dtype=jnp.float32).reshape(self.nl, -1, 2)
        self.anchors = a
        self.anchor_grid = a.reshape(self.nl, 1, -1, 1, 1, 2)

        # Conv2d(c, na*no, 1) params stored as (N, K) weight / (N, 1) bias for the
        # kernel (output channel n = anchor*no + o, PyTorch Conv2d order).
        # Deterministic fan-in uniform init mirroring PyTorch defaults.
        self.weights = []
        self.biases = []
        keys = jax.random.split(key, 2 * len(ch))
        N = self.no * self.na
        for idx, c in enumerate(ch):
            bound = 1.0 / (c ** 0.5)
            w = jax.random.uniform(
                keys[2 * idx], (N, c), minval=-bound, maxval=bound,
                dtype=jnp.float32)
            b = jax.random.uniform(
                keys[2 * idx + 1], (N, 1), minval=-bound, maxval=bound,
                dtype=jnp.float32)
            self.weights.append(w)
            self.biases.append(b)

    # TODO(synk): _make_grid/self.grid are computed in the PyTorch module but never
    # consumed by the tensors this forward returns, so they are omitted here.

    def __call__(self, xs, training=False):
        outs, z = [], []
        for i, x in enumerate(xs):
            bs, c, ny, nx = x.shape
            # Free view (no data movement): (bs, c, ny, nx) -> (bs, c, ny*nx).
            x3 = x.reshape(bs, c, ny * nx)
            raw, sig = conv1x1_head(x3, self.weights[i], self.biases[i])

            def to_head(t):
                # (bs, na*no, ny*nx) -> (bs, na, no, ny, nx) -> (bs, na, ny, nx, no)
                return jnp.transpose(
                    t.reshape(bs, self.na, self.no, ny, nx), (0, 1, 3, 4, 2))

            outs.append(to_head(raw))
            if not training:
                z.append(to_head(sig).reshape(bs, -1, self.no))

        if training:
            return outs
        return jnp.concatenate(z, axis=1), outs


def _reference_forward(head, xs, training=False):
    """Pure-JAX reference for correctness checking."""
    outs, z = [], []
    for i, x in enumerate(xs):
        bs, c, ny, nx = x.shape
        w = head.weights[i]                       # (N, K)
        b = head.biases[i].reshape(1, -1, 1, 1)   # (1, N, 1, 1)
        raw = jnp.einsum('nk,bkyx->bnyx', w, x) + b

        def to_head(t):
            return jnp.transpose(
                t.reshape(bs, head.na, head.no, ny, nx), (0, 1, 3, 4, 2))

        outs.append(to_head(raw))
        if not training:
            z.append(to_head(jax.nn.sigmoid(raw)).reshape(bs, -1, head.no))
    if training:
        return outs
    return jnp.concatenate(z, axis=1), outs


if __name__ == "__main__":
    key = jax.random.PRNGKey(0)
    k1, k2, kparam = jax.random.split(key, 3)

    anchors = ((10, 13, 16, 30, 33, 23), (30, 61, 62, 45, 59, 119))  # nl=2, na=3
    ch = (4, 8)
    head = YOLOHeadPallas(nc=2, anchors=anchors, ch=ch, key=kparam)

    # Two feature levels, small shapes. NCHW like the PyTorch module.
    x0 = jax.random.normal(k1, (2, ch[0], 16, 16), dtype=jnp.float32)
    x1 = jax.random.normal(k2, (2, ch[1], 8, 8), dtype=jnp.float32)
    xs = [x0, x1]

    z_cat, outs = head(xs, training=False)
    jax.block_until_ready(z_cat)
    for o in outs:
        jax.block_until_ready(o)

    # Sanity shapes: z_cat (2, na*(16*16+8*8), no) = (2, 960, 7)
    assert z_cat.shape == (2, 3 * (16 * 16 + 8 * 8), 7), z_cat.shape
    assert outs[0].shape == (2, 3, 16, 16, 7), outs[0].shape
    assert outs[1].shape == (2, 3, 8, 8, 7), outs[1].shape

    # Numerical check against pure-JAX reference.
    z_ref, outs_ref = _reference_forward(head, xs, training=False)
    assert jnp.allclose(z_cat, z_ref, atol=1e-5, rtol=1e-5)
    for a, b in zip(outs, outs_ref):
        assert jnp.allclose(a, b, atol=1e-5, rtol=1e-5)

    print("KERNEL_OK")
</pallas_src>

<mosaic_0001>
module attributes {stable_mosaic.version = 11 : i64} {
  func.func @_head_kernel(%arg0: i32, %arg1: i32, %arg2: memref<1x4x256xf32, #tpu.memory_space<vmem>>, %arg3: memref<21x4xf32, #tpu.memory_space<vmem>>, %arg4: memref<21x1xf32, #tpu.memory_space<vmem>>, %arg5: memref<1x21x256xf32, #tpu.memory_space<vmem>>, %arg6: memref<1x21x256xf32, #tpu.memory_space<vmem>>) attributes {dimension_semantics = [#tpu.dimension_semantics<parallel>, #tpu.dimension_semantics<parallel>], iteration_bounds = array<i64: 2, 1>, scalar_prefetch = 0 : i64, scratch_operands = 0 : i64, tpu.core_type = #tpu.core_type<tc>, window_params = [{transform_indices = @transform_0, window_bounds = array<i64: 1, 4, 256>}, {pipeline_mode = #tpu.pipeline_mode<synchronous>, transform_indices = @transform_1, window_bounds = array<i64: 21, 4>}, {pipeline_mode = #tpu.pipeline_mode<synchronous>, transform_indices = @transform_2, window_bounds = array<i64: 21, 1>}, {transform_indices = @transform_3, window_bounds = array<i64: 1, 21, 256>}, {transform_indices = @transform_4, window_bounds = array<i64: 1, 21, 256>}]} {
    %c0 = arith.constant 0 : index
    %c0_0 = arith.constant 0 : index
    %0 = vector.load %arg3[%c0, %c0_0] : memref<21x4xf32, #tpu.memory_space<vmem>>, vector<21x4xf32>
    %c0_1 = arith.constant 0 : index
    %c0_2 = arith.constant 0 : index
    %c0_3 = arith.constant 0 : index
    %1 = vector.load %arg2[%c0_1, %c0_2, %c0_3] : memref<1x4x256xf32, #tpu.memory_space<vmem>>, vector<1x4x256xf32>
    %2 = vector.shape_cast %1 : vector<1x4x256xf32> to vector<4x256xf32>
    %cst = arith.constant dense<0.000000e+00> : vector<21x256xf32>
    %3 = tpu.matmul %0, %2, %cst {dimension_numbers = #tpu.dot_dimension_numbers<[1], [0], [0], [1], [0, 0, 1, 1], [], []>} : vector<21x4xf32>, vector<4x256xf32>, vector<21x256xf32> -> vector<21x256xf32>
    %c0_4 = arith.constant 0 : index
    %c0_5 = arith.constant 0 : index
    %4 = vector.load %arg4[%c0_4, %c0_5] : memref<21x1xf32, #tpu.memory_space<vmem>>, vector<21x1xf32>
    %5 = vector.broadcast %4 : vector<21x1xf32> to vector<21x256xf32>
    %6 = arith.addf %3, %5 : vector<21x256xf32>
    %c0_6 = arith.constant 0 : index
    %c0_7 = arith.constant 0 : index
    %c0_8 = arith.constant 0 : index
    %7 = vector.load %arg5[%c0_6, %c0_7, %c0_8] : memref<1x21x256xf32, #tpu.memory_space<vmem>>, vector<1x21x256xf32>
    %8 = vector.shape_cast %7 : vector<1x21x256xf32> to vector<21x256xf32>
    %9 = vector.shape_cast %6 : vector<21x256xf32> to vector<1x21x256xf32>
    tpu.vector_store %arg5[%c0_6, %c0_7, %c0_8], %9 {strides = array<i32>} : memref<1x21x256xf32, #tpu.memory_space<vmem>>, vector<1x21x256xf32>,
    %10 = arith.negf %6 : vector<21x256xf32>
    %11 = math.exp %10 : vector<21x256xf32>
    %cst_9 = arith.constant 1.000000e+00 : f32
    %12 = vector.broadcast %cst_9 : f32 to vector<21x256xf32>
    %13 = arith.addf %12, %11 : vector<21x256xf32>
    %14 = arith.divf %12, %13 : vector<21x256xf32>
    %c0_10 = arith.constant 0 : index
    %c0_11 = arith.constant 0 : index
    %c0_12 = arith.constant 0 : index
    %15 = vector.load %arg6[%c0_10, %c0_11, %c0_12] : memref<1x21x256xf32, #tpu.memory_space<vmem>>, vector<1x21x256xf32>
    %16 = vector.shape_cast %15 : vector<1x21x256xf32> to vector<21x256xf32>
    %17 = vector.shape_cast %14 : vector<21x256xf32> to vector<1x21x256xf32>
    tpu.vector_store %arg6[%c0_10, %c0_11, %c0_12], %17 {strides = array<i32>} : memref<1x21x256xf32, #tpu.memory_space<vmem>>, vector<1x21x256xf32>,
    return
  }
  func.func @transform_0(%arg0: i32, %arg1: i32) -> (i32, i32, i32) {
    %c0_i32 = arith.constant 0 : i32
    %c0_i32_0 = arith.constant 0 : i32
    return %arg0, %c0_i32, %arg1 : i32, i32, i32
  }
  func.func @transform_1(%arg0: i32, %arg1: i32) -> (i32, i32) {
    %c0_i32 = arith.constant 0 : i32
    %c0_i32_0 = arith.constant 0 : i32
    %c0_i32_1 = arith.constant 0 : i32
    return %c0_i32, %c0_i32_0 : i32, i32
  }
  func.func @transform_2(%arg0: i32, %arg1: i32) -> (i32, i32) {
    %c0_i32 = arith.constant 0 : i32
    %c0_i32_0 = arith.constant 0 : i32
    %c0_i32_1 = arith.constant 0 : i32
    return %c0_i32, %c0_i32_0 : i32, i32
  }
  func.func @transform_3(%arg0: i32, %arg1: i32) -> (i32, i32, i32) {
    %c0_i32 = arith.constant 0 : i32
    %c0_i32_0 = arith.constant 0 : i32
    return %arg0, %c0_i32, %arg1 : i32, i32, i32
  }
  func.func @transform_4(%arg0: i32, %arg1: i32) -> (i32, i32, i32) {
    %c0_i32 = arith.constant 0 : i32
    %c0_i32_0 = arith.constant 0 : i32
    return %arg0, %c0_i32, %arg1 : i32, i32, i32
  }
}

</mosaic_0001>

<bundles_post_ra>
// kernel: tpu_custom_call.1
= control target key start
LH: loop header
LB: loop body
LE: loop exit
PB: predicated region body
PF: predicated region fallthrough
CT: control target
= control target key end

     0   :  { %s698_s15 = smov 0   ;;  %s700_s16 = smov 0   ;;  %s760_s0 = inlined_call_operand.vmem [shape: f32[2,4,256], index: 0, kind: input, shape index: {}]   ;;  %s761_s1 = inlined_call_operand.vmem [shape: f32[21,4], index: 1, kind: input, shape index: {}]   ;;  %s762_s2 = inlined_call_operand.vmem [shape: f32[21,1], index: 2, kind: input, shape index: {}]   ;;  %s763_s3 = inlined_call_operand.vmem [shape: f32[2,21,256], index: 3, kind: output, shape index: {0}]   ;;  %s764_s4 = inlined_call_operand.vmem [shape: f32[2,21,256], index: 4, kind: output, shape index: {1}]  }
   0x1   :  { %s702_s17 = smov 0  }
   0x2 LB: > { %s27_s18 = sadd.s32 1, %s665_s16  ;;  %p572_p0 = scmp.ge.s32.totalorder %s669_s17, 1  ;;  %s669_s17 = sphi %s702_s17, %s15_s17   ;;  %s665_s16 = sphi %s700_s16, %s766_s16   ;;  %s661_s15 = sphi %s698_s15, %s765_s15  }
   0x3   : > { %p29_p1 = scmp.ge.s32.totalorder %s27_s18, 2  ;;  %p188_p2 = scmp.lt.s32.totalorder %s669_s17, 3 }
   0x5   : > { %s768_s18 = smov (%p29_p1, %s27_s18), 0  ;;  %p189_p3 = pnand %p572_p0, %p188_p2 }
   0x6   : > { %p232_p4 = scmp.lt.s32.totalorder (!%p189_p3), %s661_s15, 1 }
   0x7   : > { %192 = sbr.rel (%p189_p3) target bundleno = 255 (0xff), region = 32 }
   0xc   : > { %v671_v0 = vmov 0.0   ;;  %v265_v1 = vld [vmem:[%s762_s2] sm:$0xff]  ;;  %s770_s15 = smov (!%p232_p4, %s661_s15), 1  ;;  %v672_v2 = vmov 0   ;;  %v267_v3 = vld [vmem:[%s762_s2 + $0x10] sm:$0x1f] }
   0xd   : > { %364 = vmatprep.mubr.f32.mxu0 %v671_v0  ;;  %370 = vmatprep.mubr.f32.mxu1 %v671_v0  ;;  %s590_s23 = sshll.u32 %s770_s15, 3  ;;  %v266_v4 = vld [vmem:[%s762_s2 + $0x8] sm:$0xff]  ;;  %vm295_vm0 = vcmask 1043456   ;;  %v261_v7 = vld [vmem:[%s761_s1] sm:$0xff]  ;;  %vm285_vm1 = vcmask 31744   ;;  %s593_s9 = smul.u32 48, %s770_s15 }
   0xe   : > { %620 = vset.pattern.permute.xlu0 %v672_v2  ;;  %621 = vset.pattern.permute.xlu1 %v672_v2  ;;  %s239_s28 = scalar_lea.vmem %s760_s0, %s590_s23  ;;  %v262_v8 = vld [vmem:[%s761_s1 + $0x8] sm:$0xff]  ;;  %v263_v9 = vld [vmem:[%s761_s1 + $0x10] sm:$0x1f] }
   0xf   : > { %270 = vperm.xlu0 %620, %v265_v1   ;;  %280 = vperm.xlu1 %621, %v267_v3   ;;  %v264_v5 = vld [vmem:[%s239_s28] sm:$0xff]  ;;  %s249_s12 = scalar_lea.vmem %s763_s3, %s593_s9  ;;  %s259_s19 = scalar_lea.vmem %s764_s4, %s593_s9 }
  0x10   : > { %v284_v6 = vcombine.high %v264_v5, %v264_v5 }
  0x12   : > { %577 = vmatprep.subr.msk.mxu0 %vm295_vm0, %v284_v6  ;;  %591 = vmatprep.subr.msk.mxu1 %vm295_vm0, %v284_v6 }
  0x13   : > { %275 = vperm.xlu0 %620, %v266_v4   ;;  %578 = vmatpush1.msk.msra.mxu0 %vm295_vm0, %v264_v5 }
  0x14   : > { %592 = vmatpush1.msk.msra.mxu1 %vm295_vm0, %v264_v5  ;;  %579 = vmatmul.mubr.msk.f32.vlgmr.msra.gmra.mxu0 %vm285_vm1, %v261_v7 }
  0x15   : > { %580 = vmatmul.mubr.msk.f32.vlgmr.msra.gmra.mxu1 %vm285_vm1, %v262_v8 }
  0x16   : > { %376 = vmatprep.mubr.f32.mxu1 %v671_v0 }
  0x19   : > { %581 = vmatmul.mubr.msk.f32.gmra.mxu1 %vm285_vm1, %v263_v9 }
  0x8a   : > { %v271_v10 = vpop.permute.xlu0 %270  ;;  %v281_v16 = vpop.permute.xlu1 %280 }
  0x8e   : > { %v276_v11 = vpop.permute.xlu0 %275 }
  0xd4   : > { %v366_v12 = vpop.f32.mrf.mxu0 }
  0xd5   : > { %v372_v13 = vpop.f32.mrf.mxu1  ;;  %v367_v14 = vadd.f32 %v366_v12, %v271_v10 }
  0xd6   : > { %v373_v15 = vadd.f32 %v372_v13, %v276_v11  ;;  %v368_v17 = vpop.f32.mrf.mxu0 }
  0xd7   : > { %v374_v18 = vpop.f32.mrf.mxu1  ;;  %383 = vst [vmem:[%s249_s12] sm:$0xff] %v367_v14  ;;  %v582_v19 = vmul.f32 -1.442695, %v367_v14  ;;  %v369_v21 = vadd.f32 %v368_v17, %v271_v10 }
  0xd8   : > { %385 = vst [vmem:[%s249_s12 + $0x10] sm:$0xff] %v373_v15  ;;  %v584_v20 = vmul.f32 -1.442695, %v373_v15  ;;  %v375_v22 = vadd.f32 %v374_v18, %v276_v11 }
  0xd9   : > { %v378_v23 = vpop.f32.mrf.mxu1  ;;  %623 = vpow2.f32 %v582_v19  ;;  %384 = vst [vmem:[%s249_s12 + $0x8] sm:$0xff] %v369_v21  ;;  %v583_v24 = vmul.f32 -1.442695, %v369_v21 }
  0xda   : > { %386 = vst [vmem:[%s249_s12 + $0x18] sm:$0xff] %v375_v22  ;;  %v585_v25 = vmul.f32 -1.442695, %v375_v22  ;;  %v379_v26 = vadd.f32 %v378_v23, %v281_v16  ;;  %625 = vpow2.f32 %v584_v20 }
  0xdb   : > { %v380_v27 = vpop.f32.mrf.mxu1  ;;  %627 = vpow2.f32 %v583_v24 }
  0xdc   : > { %387 = vst [vmem:[%s249_s12 + $0x20] sm:$0x1f] %v379_v26  ;;  %v586_v28 = vmul.f32 -1.442695, %v379_v26  ;;  %v381_v29 = vadd.f32 %v380_v27, %v281_v16  ;;  %629 = vpow2.f32 %v585_v25 }
  0xde   : > { %631 = vpow2.f32 %v586_v28  ;;  %388 = vst [vmem:[%s249_s12 + $0x28] sm:$0x1f] %v381_v29  ;;  %v587_v30 = vmul.f32 -1.442695, %v381_v29 }
  0xe0   : > { %633 = vpow2.f32 %v587_v30 }
  0xe6   : > { %v624_v31 = vpop.eup %623 }
  0xe7   : > { %v626_v32 = vpop.eup %625  ;;  %v407_v33 = vadd.f32 1.0, %v624_v31 }
  0xe8   : > { %v628_v34 = vpop.eup %627  ;;  %v409_v35 = vadd.f32 1.0, %v626_v32 }
  0xe9   : > { %v630_v36 = vpop.eup %629  ;;  %635 = vrcp.f32 %v407_v33  ;;  %v408_v37 = vadd.f32 1.0, %v628_v34 }
  0xea   : > { %637 = vrcp.f32 %v409_v35  ;;  %v410_v39 = vadd.f32 1.0, %v630_v36 }
  0xeb   : > { %v632_v38 = vpop.eup %631  ;;  %639 = vrcp.f32 %v408_v37 }
  0xec   : > { %v411_v40 = vadd.f32 1.0, %v632_v38  ;;  %641 = vrcp.f32 %v410_v39 }
  0xed   : > { %v634_v41 = vpop.eup %633 }
  0xee   : > { %643 = vrcp.f32 %v411_v40  ;;  %v412_v42 = vadd.f32 1.0, %v634_v41 }
  0xf0   : > { %645 = vrcp.f32 %v412_v42 }
  0xf6   : > { %v636_v43 = vpop.eup %635 }
  0xf7   : > { %v638_v44 = vpop.eup %637  ;;  %425 = vst [vmem:[%s259_s19] sm:$0xff] %v636_v43 }
  0xf8   : > { %v640_v45 = vpop.eup %639  ;;  %427 = vst [vmem:[%s259_s19 + $0x10] sm:$0xff] %v638_v44 }
  0xf9   : > { %v642_v46 = vpop.eup %641  ;;  %426 = vst [vmem:[%s259_s19 + $0x8] sm:$0xff] %v640_v45 }
  0xfa   : > { %428 = vst [vmem:[%s259_s19 + $0x18] sm:$0xff] %v642_v46 }
  0xfb   : > { %v644_v47 = vpop.eup %643 }
  0xfc   : > { %429 = vst [vmem:[%s259_s19 + $0x20] sm:$0x1f] %v644_v47 }
  0xfd   : > { %v646_v48 = vpop.eup %645 }
  0xfe   : > { %430 = vst [vmem:[%s259_s19 + $0x28] sm:$0x1f] %v646_v48 }
  0xff PF: > { %s15_s17 = sadd.s32 1, %s669_s17   ;;  %s765_s15 = smov %s665_s16 }
 0x100   : > { %p12_p5 = scmp.ge.s32.totalorder %s15_s17, 4   ;;  %s766_s16 = smov %s768_s18 }
 0x102   :  { %14 = sbr.rel (!%p12_p5) target bundleno = 2 (0x2), region = 74 }

</bundles_post_ra>
